<compile_context>
chip_gen: v7x
topology: tpu7x:2x2x1
jax: 0.10.0
libtpu: 0.0.40
codegen_flags: <defaults>
</compile_context>

<pallas_src>
import functools
import math

import jax
import jax.numpy as jnp
from jax import lax
from jax.experimental import pallas as pl
from jax.experimental.pallas import tpu as pltpu

_EPS = 1e-5


def _pick_tile(n, cap):
    """Largest divisor of n that is <= cap and a multiple of 8 (else the full extent)."""
    if n <= cap:
        return n
    for t in range(min(cap, n), 7, -1):
        if n % t == 0 and t % 8 == 0:
            return t
    # TODO(synk): pad awkward lengths instead of falling back to a full-extent tile.
    return n


def _kv_proj_kernel(x_ref, wk_ref, wv_ref, gains_ref, k_ref, v_ref):
    """ScaleNorm(x) + K/V projections, computed once per (batch, Lx tile)."""
    x = x_ref[0].astype(jnp.float32)                                    # (TKV, H)
    gx = gains_ref[0]
    # 1/max(||x||, eps) == rsqrt(max(sum(x^2), eps^2))  -- single EUP op.
    inv = lax.rsqrt(jnp.maximum(jnp.sum(x * x, axis=-1, keepdims=True), _EPS * _EPS))
    xn = (x * (gx * inv)).astype(wk_ref.dtype)
    k_ref[0] = jnp.dot(xn, wk_ref[...],
                       preferred_element_type=jnp.float32).astype(k_ref.dtype)
    v_ref[0] = jnp.dot(xn, wv_ref[...],
                       preferred_element_type=jnp.float32).astype(v_ref.dtype)


def _attn_kernel(y_ref, k_ref, v_ref, wq_ref, wo_ref, bo_ref, gains_ref,
                 o_ref, attn_ref, *, num_heads):
    """ScaleNorm(y) -> full-H Q projection -> per-head attention -> single full-H out proj."""
    cdt = wq_ref.dtype                                                  # MXU operand dtype
    H = y_ref.shape[-1]
    dh = H // num_heads

    y = y_ref[0].astype(jnp.float32)                                    # (TQ, H)
    gy = gains_ref[1]
    inv = lax.rsqrt(jnp.maximum(jnp.sum(y * y, axis=-1, keepdims=True), _EPS * _EPS))
    yn = (y * (gy * inv)).astype(cdt)

    # Full-width Q projection; 1/sqrt(dh) is pre-folded into wq_ref in the wrapper.
    q = jnp.dot(yn, wq_ref[...], preferred_element_type=jnp.float32)    # (TQ, H) f32
    k = k_ref[0]                                                        # (Lx, H) in cdt
    v = v_ref[0]                                                        # (Lx, H) in cdt

    # Heads as a short static loop: the per-head matmuls are inherently dh-wide, but
    # the expensive projections above/below run at full H width on the MXU.
    # TODO(synk): flash-style online softmax over Lx tiles for very long Lx.
    for h in range(num_heads):
        sl = slice(h * dh, (h + 1) * dh)
        qh = q[:, sl].astype(cdt)
        kh = k[:, sl]
        vh = v[:, sl]
        s = lax.dot_general(qh, kh, (((1,), (1,)), ((), ())),
                            preferred_element_type=jnp.float32)         # (TQ, Lx)
        s = s - jnp.max(s, axis=-1, keepdims=True)
        p = jnp.exp(s)
        p = p * pl.reciprocal(jnp.sum(p, axis=-1, keepdims=True))       # exact reciprocal
        attn_ref[:, sl] = jnp.dot(p.astype(cdt), vh,
                                  preferred_element_type=jnp.float32).astype(cdt)

    # One full-H output projection with the whole Wo (fills the MXU contraction dim),
    # then bias + residual with the un-normalized queries y.
    out = jnp.dot(attn_ref[...], wo_ref[...], preferred_element_type=jnp.float32)
    o_ref[0] = (out + bo_ref[...].astype(jnp.float32) + y).astype(o_ref.dtype)


def sublayer3_pallas(x, y, params, *, num_heads, q_tile=None, kv_tile=None,
                     mxu_dtype=jnp.bfloat16):
    """x: (B, Lx, H) keys/values source; y: (B, Ly, H) queries source."""
    B, Lx, H = x.shape
    _, Ly, _ = y.shape
    wq, wk, wv, wo, bo, sx, sy = params
    assert H % num_heads == 0
    dh = H // num_heads
    scale = 1.0 / math.sqrt(dh)

    # Free layout plumbing in the wrapper: transpose weights so the MXU consumes them
    # directly, and fold the attention scale into Wq.
    wq_t = (wq.T.astype(jnp.float32) * scale).astype(mxu_dtype)   # (H, H)
    wk_t = wk.T.astype(mxu_dtype)
    wv_t = wv.T.astype(mxu_dtype)
    wo_t = wo.T.astype(mxu_dtype)
    bo_c = bo.astype(jnp.float32).reshape(1, H)
    gains = jnp.concatenate([sx.reshape(-1), sy.reshape(-1)]).astype(jnp.float32)  # (2,)

    # ---- Pre-pass: K / V projections, once per batch element (never redone per head/tile).
    if kv_tile is None:
        kv_tile = _pick_tile(Lx, 256)
    assert Lx % kv_tile == 0
    n_kv = Lx // kv_tile

    k, v = pl.pallas_call(
        _kv_proj_kernel,
        out_shape=(jax.ShapeDtypeStruct((B, Lx, H), mxu_dtype),
                   jax.ShapeDtypeStruct((B, Lx, H), mxu_dtype)),
        grid_spec=pltpu.PrefetchScalarGridSpec(
            num_scalar_prefetch=0,
            grid=(B, n_kv),
            in_specs=[
                pl.BlockSpec((1, kv_tile, H), lambda b, i: (b, i, 0)),   # x (K/V source)
                pl.BlockSpec((H, H), lambda b, i: (0, 0)),               # Wk^T (resident)
                pl.BlockSpec((H, H), lambda b, i: (0, 0)),               # Wv^T (resident)
                pl.BlockSpec(memory_space=pltpu.MemorySpace.SMEM),       # ScaleNorm gains (2,)
            ],
            out_specs=[pl.BlockSpec((1, kv_tile, H), lambda b, i: (b, i, 0)),
                       pl.BlockSpec((1, kv_tile, H), lambda b, i: (b, i, 0))],
        ),
        compiler_params=pltpu.CompilerParams(
            dimension_semantics=("parallel", "parallel")),
    )(x, wk_t, wv_t, gains)

    # ---- Main attention kernel over (batch, query tile); both axes fully parallel.
    if q_tile is None:
        cap = 256 if B > 1 else min(256, max(8, Ly // 2))   # keep >=2 parallel steps on v7x
        q_tile = _pick_tile(Ly, cap)
    assert Ly % q_tile == 0
    n_q = Ly // q_tile

    out_dtype = y.dtype
    isz = lambda dt: jnp.dtype(dt).itemsize
    vmem_est = (2 * q_tile * H * isz(y.dtype)          # y blocks (double-buffered)
                + 2 * 2 * Lx * H * isz(mxu_dtype)      # K, V blocks
                + 2 * 2 * H * H * isz(mxu_dtype)       # Wq, Wo (resident)
                + 2 * H * isz(jnp.float32)             # bo
                + 2 * q_tile * H * isz(out_dtype)      # output blocks
                + q_tile * H * isz(mxu_dtype)          # concat-heads scratch
                + q_tile * Lx * 4)                     # per-head f32 score matrix
    vmem_limit = int(min(60 * 2**20, max(32 * 2**20, 2 * vmem_est)))

    return pl.pallas_call(
        functools.partial(_attn_kernel, num_heads=num_heads),
        out_shape=jax.ShapeDtypeStruct((B, Ly, H), out_dtype),
        grid_spec=pltpu.PrefetchScalarGridSpec(
            num_scalar_prefetch=0,
            grid=(B, n_q),
            in_specs=[
                pl.BlockSpec((1, q_tile, H), lambda b, j: (b, j, 0)),    # y (queries)
                pl.BlockSpec((1, Lx, H), lambda b, j: (b, 0, 0)),        # K (per batch, reused over j)
                pl.BlockSpec((1, Lx, H), lambda b, j: (b, 0, 0)),        # V
                pl.BlockSpec((H, H), lambda b, j: (0, 0)),               # Wq^T * 1/sqrt(dh) (resident)
                pl.BlockSpec((H, H), lambda b, j: (0, 0)),               # Wo^T (resident)
                pl.BlockSpec((1, H), lambda b, j: (0, 0)),               # bo
                pl.BlockSpec(memory_space=pltpu.MemorySpace.SMEM),       # ScaleNorm gains (2,)
            ],
            out_specs=pl.BlockSpec((1, q_tile, H), lambda b, j: (b, j, 0)),
            scratch_shapes=[pltpu.VMEM((q_tile, H), mxu_dtype)],         # concat-heads buffer
        ),
        compiler_params=pltpu.CompilerParams(
            dimension_semantics=("parallel", "parallel"),
            vmem_limit_bytes=vmem_limit),
    )(y, k, v, wq_t, wo_t, bo_c, gains)


def sublayer3_ref(x, y, params, *, num_heads, mxu_dtype=jnp.bfloat16):
    """Pure-JAX reference mirroring the kernel's operand dtypes (f32 accumulation)."""
    wq, wk, wv, wo, bo, sx, sy = params
    B, Ly, H = y.shape
    dh = H // num_heads
    scale = 1.0 / math.sqrt(dh)

    def scalenorm(a, g):
        n = jnp.linalg.norm(a, axis=-1, keepdims=True)
        return a * (g / jnp.maximum(n, _EPS))

    xf = x.astype(jnp.float32)
    yf = y.astype(jnp.float32)
    xn = scalenorm(xf, sx[0, 0]).astype(mxu_dtype)
    yn = scalenorm(yf, sy[0, 0]).astype(mxu_dtype)

    wq_t = (wq.T.astype(jnp.float32) * scale).astype(mxu_dtype)
    wk_t = wk.T.astype(mxu_dtype)
    wv_t = wv.T.astype(mxu_dtype)
    wo_t = wo.T.astype(mxu_dtype)

    q = jnp.einsum("bld,dh->blh", yn, wq_t, preferred_element_type=jnp.float32)
    k = jnp.einsum("bld,dh->blh", xn, wk_t, preferred_element_type=jnp.float32).astype(mxu_dtype)
    v = jnp.einsum("bld,dh->blh", xn, wv_t, preferred_element_type=jnp.float32).astype(mxu_dtype)

    def split(a):  # (B, L, H) -> (B, nh, L, dh)
        bb, ll, _ = a.shape
        return a.reshape(bb, ll, num_heads, dh).transpose(0, 2, 1, 3)

    qh = split(q.astype(mxu_dtype))
    kh, vh = split(k), split(v)
    s = jnp.einsum("bhqd,bhkd->bhqk", qh, kh, preferred_element_type=jnp.float32)
    p = jax.nn.softmax(s, axis=-1)
    o = jnp.einsum("bhqk,bhkd->bhqd", p.astype(mxu_dtype), vh,
                   preferred_element_type=jnp.float32)
    o = o.transpose(0, 2, 1, 3).reshape(B, Ly, H).astype(mxu_dtype)
    out = jnp.einsum("bld,dh->blh", o, wo_t, preferred_element_type=jnp.float32)
    return out + bo.reshape(1, 1, H).astype(jnp.float32) + yf


if __name__ == "__main__":
    # Small shapes consistent with the module's forward (x, y: [B, L, hidden]).
    B, Lx, Ly, H, NH = 2, 8, 8, 32, 4

    key = jax.random.PRNGKey(0)
    kx, ky, k1, k2, k3, k4, k5 = jax.random.split(key, 7)

    x = jax.random.normal(kx, (B, Lx, H), dtype=jnp.float32)
    y = jax.random.normal(ky, (B, Ly, H), dtype=jnp.float32)

    lin_scale = 1.0 / math.sqrt(H)
    wq = jax.random.uniform(k1, (H, H), jnp.float32, -lin_scale, lin_scale)
    wk = jax.random.uniform(k2, (H, H), jnp.float32, -lin_scale, lin_scale)
    wv = jax.random.uniform(k3, (H, H), jnp.float32, -lin_scale, lin_scale)
    wo = jax.random.uniform(k4, (H, H), jnp.float32, -lin_scale, lin_scale)
    bo = jax.random.uniform(k5, (1, H), jnp.float32, -lin_scale, lin_scale)
    sx = jnp.full((1, 1), math.sqrt(H), dtype=jnp.float32)  # ScaleNorm g (x path)
    sy = jnp.full((1, 1), math.sqrt(H), dtype=jnp.float32)  # ScaleNorm g (y path)
    params = (wq, wk, wv, wo, bo, sx, sy)

    # f32 MXU operands (reference-parity check).
    out_f32 = jax.block_until_ready(
        sublayer3_pallas(x, y, params, num_heads=NH, mxu_dtype=jnp.float32))
    ref_f32 = sublayer3_ref(x, y, params, num_heads=NH, mxu_dtype=jnp.float32)
    assert out_f32.shape == (B, Ly, H)
    assert jnp.allclose(out_f32, ref_f32, atol=1e-2, rtol=1e-2), "f32 mismatch vs reference"

    # bf16 MXU operands (default fast path); reference mirrors the bf16 operand casts.
    out_bf16 = jax.block_until_ready(
        sublayer3_pallas(x, y, params, num_heads=NH))
    ref_bf16 = sublayer3_ref(x, y, params, num_heads=NH, mxu_dtype=jnp.bfloat16)
    assert jnp.allclose(out_bf16, ref_bf16, atol=5e-2, rtol=5e-2), "bf16 mismatch vs reference"

    print("KERNEL_OK")
</pallas_src>

<mosaic_0001>
module attributes {stable_mosaic.version = 11 : i64} {
  func.func @_kv_proj_kernel(%arg0: i32, %arg1: i32, %arg2: memref<1x8x32xf32, #tpu.memory_space<vmem>>, %arg3: memref<32x32xf32, #tpu.memory_space<vmem>>, %arg4: memref<32x32xf32, #tpu.memory_space<vmem>>, %arg5: memref<2xf32, #tpu.memory_space<smem>>, %arg6: memref<1x8x32xf32, #tpu.memory_space<vmem>>, %arg7: memref<1x8x32xf32, #tpu.memory_space<vmem>>) attributes {dimension_semantics = [#tpu.dimension_semantics<parallel>, #tpu.dimension_semantics<parallel>], iteration_bounds = array<i64: 2, 1>, scalar_prefetch = 0 : i64, scratch_operands = 0 : i64, tpu.core_type = #tpu.core_type<tc>, window_params = [{transform_indices = @transform_0, window_bounds = array<i64: 1, 8, 32>}, {pipeline_mode = #tpu.pipeline_mode<synchronous>, transform_indices = @transform_1, window_bounds = array<i64: 32, 32>}, {pipeline_mode = #tpu.pipeline_mode<synchronous>, transform_indices = @transform_2, window_bounds = array<i64: 32, 32>}, {transform_indices = @transform_3, window_bounds = array<i64: 2>}, {transform_indices = @transform_4, window_bounds = array<i64: 1, 8, 32>}, {transform_indices = @transform_5, window_bounds = array<i64: 1, 8, 32>}]} {
    %c0 = arith.constant 0 : index
    %c0_0 = arith.constant 0 : index
    %c0_1 = arith.constant 0 : index
    %0 = vector.load %arg2[%c0, %c0_0, %c0_1] : memref<1x8x32xf32, #tpu.memory_space<vmem>>, vector<1x8x32xf32>
    %1 = vector.shape_cast %0 : vector<1x8x32xf32> to vector<8x32xf32>
    %c0_2 = arith.constant 0 : index
    %2 = memref.load %arg5[%c0_2] : memref<2xf32, #tpu.memory_space<smem>>
    %3 = arith.mulf %1, %1 : vector<8x32xf32>
    %cst = arith.constant dense<0.000000e+00> : vector<8xf32>
    %4 = vector.multi_reduction <add>, %3, %cst [1] : vector<8x32xf32> to vector<8xf32>
    %5 = vector.shape_cast %4 : vector<8xf32> to vector<8x1xf32>
    %cst_3 = arith.constant 1.000000e-10 : f32
    %6 = vector.broadcast %cst_3 : f32 to vector<8x1xf32>
    %7 = arith.maximumf %5, %6 : vector<8x1xf32>
    %8 = math.rsqrt %7 : vector<8x1xf32>
    %9 = vector.broadcast %2 : f32 to vector<8x1xf32>
    %10 = arith.mulf %9, %8 : vector<8x1xf32>
    %11 = vector.broadcast %10 : vector<8x1xf32> to vector<8x32xf32>
    %12 = arith.mulf %1, %11 : vector<8x32xf32>
    %c0_4 = arith.constant 0 : index
    %c0_5 = arith.constant 0 : index
    %13 = vector.load %arg3[%c0_4, %c0_5] : memref<32x32xf32, #tpu.memory_space<vmem>>, vector<32x32xf32>
    %cst_6 = arith.constant dense<0.000000e+00> : vector<8x32xf32>
    %14 = tpu.matmul %12, %13, %cst_6 {dimension_numbers = #tpu.dot_dimension_numbers<[1], [0], [0], [1], [0, 0, 1, 1], [], []>} : vector<8x32xf32>, vector<32x32xf32>, vector<8x32xf32> -> vector<8x32xf32>
    %c0_7 = arith.constant 0 : index
    %c0_8 = arith.constant 0 : index
    %c0_9 = arith.constant 0 : index
    %15 = vector.load %arg6[%c0_7, %c0_8, %c0_9] : memref<1x8x32xf32, #tpu.memory_space<vmem>>, vector<1x8x32xf32>
    %16 = vector.shape_cast %15 : vector<1x8x32xf32> to vector<8x32xf32>
    %17 = vector.shape_cast %14 : vector<8x32xf32> to vector<1x8x32xf32>
    tpu.vector_store %arg6[%c0_7, %c0_8, %c0_9], %17 {strides = array<i32>} : memref<1x8x32xf32, #tpu.memory_space<vmem>>, vector<1x8x32xf32>,
    %c0_10 = arith.constant 0 : index
    %c0_11 = arith.constant 0 : index
    %18 = vector.load %arg4[%c0_10, %c0_11] : memref<32x32xf32, #tpu.memory_space<vmem>>, vector<32x32xf32>
    %cst_12 = arith.constant dense<0.000000e+00> : vector<8x32xf32>
    %19 = tpu.matmul %12, %18, %cst_12 {dimension_numbers = #tpu.dot_dimension_numbers<[1], [0], [0], [1], [0, 0, 1, 1], [], []>} : vector<8x32xf32>, vector<32x32xf32>, vector<8x32xf32> -> vector<8x32xf32>
    %c0_13 = arith.constant 0 : index
    %c0_14 = arith.constant 0 : index
    %c0_15 = arith.constant 0 : index
    %20 = vector.load %arg7[%c0_13, %c0_14, %c0_15] : memref<1x8x32xf32, #tpu.memory_space<vmem>>, vector<1x8x32xf32>
    %21 = vector.shape_cast %20 : vector<1x8x32xf32> to vector<8x32xf32>
    %22 = vector.shape_cast %19 : vector<8x32xf32> to vector<1x8x32xf32>
    tpu.vector_store %arg7[%c0_13, %c0_14, %c0_15], %22 {strides = array<i32>} : memref<1x8x32xf32, #tpu.memory_space<vmem>>, vector<1x8x32xf32>,
    return
  }
  func.func @transform_0(%arg0: i32, %arg1: i32) -> (i32, i32, i32) {
    %c0_i32 = arith.constant 0 : i32
    %c0_i32_0 = arith.constant 0 : i32
    return %arg0, %arg1, %c0_i32 : i32, i32, i32
  }
  func.func @transform_1(%arg0: i32, %arg1: i32) -> (i32, i32) {
    %c0_i32 = arith.constant 0 : i32
    %c0_i32_0 = arith.constant 0 : i32
    %c0_i32_1 = arith.constant 0 : i32
    return %c0_i32, %c0_i32_0 : i32, i32
  }
  func.func @transform_2(%arg0: i32, %arg1: i32) -> (i32, i32) {
    %c0_i32 = arith.constant 0 : i32
    %c0_i32_0 = arith.constant 0 : i32
    %c0_i32_1 = arith.constant 0 : i32
    return %c0_i32, %c0_i32_0 : i32, i32
  }
  func.func @transform_3(%arg0: i32, %arg1: i32) -> i32 {
    %c0_i32 = arith.constant 0 : i32
    %c0_i32_0 = arith.constant 0 : i32
    return %c0_i32 : i32
  }
  func.func @transform_4(%arg0: i32, %arg1: i32) -> (i32, i32, i32) {
    %c0_i32 = arith.constant 0 : i32
    %c0_i32_0 = arith.constant 0 : i32
    return %arg0, %arg1, %c0_i32 : i32, i32, i32
  }
  func.func @transform_5(%arg0: i32, %arg1: i32) -> (i32, i32, i32) {
    %c0_i32 = arith.constant 0 : i32
    %c0_i32_0 = arith.constant 0 : i32
    return %arg0, %arg1, %c0_i32 : i32, i32, i32
  }
}

</mosaic_0001>

<bundles_post_ra>
// kernel: tpu_custom_call.1
= control target key start
LH: loop header
LB: loop body
LE: loop exit
PB: predicated region body
PF: predicated region fallthrough
CT: control target
= control target key end

     0   :  { %s1402_s0 = inlined_call_operand.hbm [shape: f32[2,8,32], index: 0, kind: input, shape index: {}]   ;;  %s1403_s1 = inlined_call_operand.hbm [shape: f32[32,32], index: 1, kind: input, shape index: {}]   ;;  %s1404_s2 = inlined_call_operand.hbm [shape: f32[32,32], index: 2, kind: input, shape index: {}]   ;;  %s1405_s3 = inlined_call_operand.vmem [shape: f32[2], index: 3, kind: input, shape index: {}]   ;;  %s1406_s4 = inlined_call_operand.hbm [shape: f32[2,8,32], index: 4, kind: output, shape index: {0}]   ;;  %s1407_s5 = inlined_call_operand.hbm [shape: f32[2,8,32], index: 5, kind: output, shape index: {1}]  }
   0x1   :  { %1413 = sst [smem:[#allocation19_spill]] %s1405_s3 }
   0x2   :  { %11 = vsyncpa [#allocation3], 0 }
   0x3   :  { %13 = vsyncpa [#allocation3 + $0x1], 0 }
   0x4   :  { %14 = vsyncpa [#allocation7], 0 }
   0x5   :  { %15 = vsyncpa [#allocation5], 0 }
   0x6   :  { %16 = vsyncpa [#allocation4], 0 }
   0x7   :  { %18 = vsyncpa [#allocation4 + $0x1], 0 }
   0x8   :  { %19 = vsyncpa [#allocation12], 0 }
   0x9   :  { %21 = vsyncpa [#allocation12 + $0x1], 0  ;;  %s1095_s18 = smov 0   ;;  %s1097_s19 = smov 0  }
   0xa   :  { %s1099_s20 = smov 0   ;;  %s1101_s21 = smov 0  }
   0xb   :  { %s1103_s22 = smov 0   ;;  %s1105_s23 = smov 0  }
   0xc LB: > { %s656_s24 = sadd.s32 4294967295, %s1052_s23   ;;  %s657_s25 = sadd.s32 4294967294, %s1052_s23   ;;  %s1052_s23 = sphi %s1105_s23, %s27_s23   ;;  %s1048_s22 = sphi %s1103_s22, %s1435_s22   ;;  %s1044_s21 = sphi %s1101_s21, %s1434_s21   ;;  %s1040_s20 = sphi %s1099_s20, %s1433_s20   ;;  %s1036_s19 = sphi %s1097_s19, %s1432_s19   ;;  %s1032_s18 = sphi %s1095_s18, %s1431_s18  }
   0xd   : > { %p61_p0 = scmp.ne.s32.totalorder %s1036_s19, %s1032_s18  ;;  %p1129_p1 = scmp.eq.s32.totalorder %s656_s24, 0 }
   0xe   : > { %p1133_p2 = scmp.eq.s32.totalorder %s656_s24, 1  ;;  %p156_p3 = scmp.eq.s32.totalorder %s657_s25, 1 }
   0xf   : > { %s1414_s26 = scalar_select %p1129_p1, 1, 0 }
  0x10   : > { %p1139_p4 = por %p1129_p1, %p61_p0  ;;  %p658_p5 = scmp.ge.s32.totalorder %s1052_s23, 1 }
  0x11   : > { %p1144_p6 = por %p156_p3, %p61_p0  ;;  %p191_p7 = scmp.lt.s32.totalorder %s1052_s23, 3 }
  0x12   : > { %s1416_s28 = scalar_select %p1139_p4, 1, 0 }
  0x13   : > { %s1417_s29 = scalar_select %p1144_p6, 1, 0 }
  0x14   : > { %p1149_p8 = pnand %p658_p5, %p191_p7  ;;  %s1054_s6 = smov [#allocation6]  }
  0x15   : > { %1418 = sst [smem:[#allocation18_spill]] %s1417_s29  ;;  %s203_s7 = sshll.u32 %s1054_s6, 4  ;;  %s1153_s7 = int_to_ptr.vmem [resolvable:$true] %s203_s7 }
  0x16   : > { %p742_p9 = pneg %p1149_p8  ;;  %s1055_s9 = smov [#allocation8]  }
  0x17   : > { %s216_s10 = sshll.u32 %s1055_s9, 4  ;;  %s1421_s3 = sld [smem:[#allocation19_spill]]  ;;  %s1164_s10 = int_to_ptr.vmem [resolvable:$true] %s216_s10 }
  0x18   : > { %p1160_p11 = pnand %p742_p9, %p1129_p1  ;;  %s829_s16 = scalar_lea.hbm %s1403_s1, 512 }
  0x19   : > { %p830_p12 = scmp.ne.s32.totalorder %s1403_s1, %s829_s16  ;;  %p836_p5 = scmp.lt.u32.totalorder %s829_s16, %s1403_s1 }
  0x1a   : > { %p1179_p13 = pneg %p1160_p11 }
  0x1c   : > { %p832_p0 = pnand %p1179_p13, %p830_p12 }
  0x1d   : > { %s230_s13 = sshll.u32 %s1421_s3, 4  ;;  %s1169_s13 = int_to_ptr.vmem [resolvable:$true] %s230_s13 }
  0x1e   : > { %p833_p3 = pneg %p832_p0 }
  0x20   : > { %p838_p7 = pnand %p836_p5, %p833_p3 }
  0x22   : > { %841 = shalt.err (!%p838_p7)
}
  0x23   : > { %s842_s11 = scalar_lea.vmem %s1153_s7, 512  ;;  %p850_p1 = scmp.lt.s32.totalorder %s1153_s7, %s1153_s7 }
  0x24   : > { %p843_p9 = scmp.ne.s32.totalorder %s1153_s7, %s842_s11  ;;  %p851_p4 = scmp.lt.s32.totalorder %s842_s11, %s842_s11 }
  0x26   : > { %p845_p10 = pnand %p843_p9, %p1179_p13  ;;  %p852_p12 = por %p851_p4, %p850_p1 }
  0x28   : > { %p846_p6 = pneg %p845_p10 }
  0x2a   : > { %p853_p0 = pnand %p852_p12, %p846_p6 }
  0x2c   : > { %856 = shalt.err (!%p853_p0)
}
  0x2d   : > { %s1056_s12 = smov 128   ;;  %s1057_s14 = smov 8  }
  0x2e   : > { %745 = dma.hbm_to_vmem [thread:$0]  (!%p1160_p11), %s1403_s1, 512, %s1153_s7, [#allocation7], %s1056_s12, %s1056_s12, %s1057_s14  }
  0x2f   : > { %s857_s6 = scalar_lea.hbm %s1404_s2, 512 }
  0x30   : > { %p858_p1 = scmp.ne.s32.totalorder %s1404_s2, %s857_s6  ;;  %p864_p10 = scmp.lt.u32.totalorder %s857_s6, %s1404_s2 }
  0x32   : > { %p860_p4 = pnand %p858_p1, %p1179_p13 }
  0x34   : > { %p861_p6 = pneg %p860_p4 }
  0x36   : > { %p866_p3 = pnand %p864_p10, %p861_p6 }
  0x38   : > { %869 = shalt.err (!%p866_p3)
}
  0x39   : > { %s870_s7 = scalar_lea.vmem %s1164_s10, 512  ;;  %p878_p12 = scmp.lt.s32.totalorder %s1164_s10, %s1164_s10 }
  0x3a   : > { %p871_p5 = scmp.ne.s32.totalorder %s1164_s10, %s870_s7  ;;  %p879_p0 = scmp.lt.s32.totalorder %s870_s7, %s870_s7 }
  0x3c   : > { %p873_p7 = pnand %p871_p5, %p1179_p13  ;;  %p880_p1 = por %p879_p0, %p878_p12 }
  0x3e   : > { %p874_p9 = pneg %p873_p7 }
  0x40   : > { %p881_p4 = pnand %p880_p1, %p874_p9 }
  0x42   : > { %884 = shalt.err (!%p881_p4)
}
  0x43   : > { %748 = dma.hbm_to_vmem [thread:$0]  (!%p1160_p11), %s1404_s2, 512, %s1164_s10, [#allocation7], %s1056_s12, %s1056_s12, %s1057_s14  }
  0x44   : > { %s885_s15 = scalar_lea.vmem %s1169_s13, 16  ;;  %p893_p5 = scmp.lt.s32.totalorder %s1169_s13, %s1169_s13 }
  0x45   : > { %p886_p6 = scmp.ne.s32.totalorder %s1169_s13, %s885_s15  ;;  %p894_p7 = scmp.lt.s32.totalorder %s885_s15, %s885_s15 }
  0x47   : > { %p888_p10 = pnand %p886_p6, %p1179_p13  ;;  %p895_p9 = por %p894_p7, %p893_p5 }
  0x49   : > { %p889_p3 = pneg %p888_p10 }
  0x4b   : > { %p896_p12 = pnand %p895_p9, %p889_p3 }
  0x4d   : > { %899 = shalt.err (!%p896_p12)
}
  0x4e   : > { %s1058_s16 = smov [#allocation9]   ;;  %s48_s10 = sadd.s32 1, %s1040_s20 }
  0x4f   : > { %751 = dma.vmem_to_smem (!%p1160_p11), %s1169_s13, 16, %s1058_s16, [#allocation5]  }
  0x50   : > { %s39_s25 = sadd.s32 1, %s1048_s22  ;;  %p55_p13 = scmp.ne.s32.totalorder %s1040_s20, %s1036_s19 }
  0x51   : > { %p41_p0 = scmp.ge.s32.totalorder %s39_s25, 2  ;;  %p56_p1 = scmp.eq.s32.totalorder %s1052_s23, 0 }
  0x52   : > { %p1239_p4 = por %p1133_p2, %p55_p13  ;;  %p766_p6 = scmp.lt.s32.totalorder %s1052_s23, 2 }
  0x53   : > { %s1437_s25 = smov (%p41_p0, %s39_s25), 0  ;;  %p57_p10 = por %p56_p1, %p55_p13 }
  0x54   : > { %s1423_s8 = scalar_select %p1239_p4, 1, 0 }
  0x55   : > { %s241_s12 = sand.u32 1, %s1040_s20   ;;  %s43_s14 = ssub.s32 %s1048_s22, %s1437_s25 }
  0x56   : > { %p46_p3 = scmp.eq.s32.totalorder %s43_s14, 0  ;;  %s663_s13 = sshll.u32 %s241_s12, 3 }
  0x57   : > { %s664_s17 = sshll.u32 %s1048_s22, 7  ;;  %s245_s11 = scalar_lea.vmem [#allocation2], %s663_s13 }
  0x58   : > { %s1251_s24 = scalar_select %p46_p3, %s1040_s20, %s48_s10  }
  0x59   : > { %s1256_s27 = scalar_lea.hbm %s1402_s0, %s664_s17  ;;  %s253_s7 = sshll.u32 %s245_s11, 4  ;;  %s1258_s7 = int_to_ptr.vmem [resolvable:$true] %s253_s7 }
  0x5a   : > { %p1262_p2 = pnand %p766_p6, %p57_p10  ;;  %s242_s29 = scalar_lea.sflag [#allocation3], %s241_s12 }
  0x5b   : > { %s900_s15 = scalar_lea.hbm %s1256_s27, 128  ;;  %s905_s14 = scalar_lea.hbm %s1402_s0, 256 }
  0x5c   : > { %p901_p11 = scmp.ne.s32.totalorder %s1256_s27, %s900_s15  ;;  %p902_p5 = pneg %p1262_p2 }
  0x5d   : > { %p906_p12 = scmp.lt.u32.totalorder %s1256_s27, %s1402_s0  ;;  %p907_p13 = scmp.lt.u32.totalorder %s905_s14, %s900_s15 }
  0x5e   : > { %p903_p7 = pnand %p902_p5, %p901_p11  ;;  %p909_p1 = scmp.lt.u32.totalorder %s900_s15, %s1256_s27 }
  0x5f   : > { %p908_p0 = por %p907_p13, %p906_p12 }
  0x60   : > { %p904_p9 = pneg %p903_p7 }
  0x61   : > { %p910_p6 = por %p909_p1, %p908_p0 }
  0x63   : > { %p911_p10 = pnand %p910_p6, %p904_p9 }
  0x65   : > { %914 = shalt.err (!%p911_p10)
}
  0x66   : > { %s915_s12 = scalar_lea.vmem %s1258_s7, 128  ;;  %s1059_s6 = smov [#allocation2]  }
  0x67   : > { %p916_p3 = scmp.ne.s32.totalorder %s1258_s7, %s915_s12  ;;  %s920_s9 = sshll.u32 %s1059_s6, 4  ;;  %s921_s9 = int_to_ptr.vmem [resolvable:$false] %s920_s9 }
  0x68   : > { %s922_s11 = scalar_lea.vmem %s921_s9, 256  ;;  %p923_p4 = scmp.lt.s32.totalorder %s1258_s7, %s921_s9 }
  0x69   : > { %p918_p11 = pnand %p916_p3, %p902_p5  ;;  %p924_p12 = scmp.lt.s32.totalorder %s922_s11, %s915_s12 }
  0x6b   : > { %p919_p7 = pneg %p918_p11  ;;  %p925_p13 = por %p924_p12, %p923_p4 }
  0x6d   : > { %p926_p0 = pnand %p925_p13, %p919_p7 }
  0x6f   : > { %929 = shalt.err (!%p926_p0)
}
  0x70   : > { %755 = dma.hbm_to_vmem [thread:$0]  (!%p1262_p2), %s1256_s27, 128, %s1258_s7, %s242_s29  }
  0x71   : > { %262 = sbr.rel (%p1149_p8) target bundleno = 540 (0x21c), region = 36  ;;  %s1294_s15 = sand.u32 (!%p1149_p8), 1, %s1036_s19  }
  0x72   : > { %s1297_s16 = sshll.u32 (!%p1149_p8), %s1294_s15, 3  ;;  %s265_s10 = scalar_lea.sflag (!%p1149_p8), [#allocation3], %s1294_s15 }
  0x73   : > { %s268_s14 = scalar_lea.vmem (!%p1149_p8), [#allocation2], %s1297_s16  ;;  %p1425_p4 = scmp.ne.s32.totalorder (!%p1149_p8), %s1416_s28, 0 }
  0x78   : > { %1011 = dma.done.wait (%p1425_p4), %s265_s10, 128  }
  0x79   : > { %1013 = vsyncadd (%p1425_p4), %s265_s10, 4294967168  ;;  %p1426_p2 = scmp.ne.s32.totalorder %s1414_s26, 0 }
  0x7b   : > { %1015 = dma.done.wait (%p1426_p2), [#allocation7], 1024  }
  0x7c   : > { %1017 = vsyncadd (%p1426_p2), [#allocation7], 4294966272 }
  0x7d   : > { %1019 = dma.done.wait (%p1426_p2), [#allocation5], 16  }
  0x7e   : > { %1021 = vsyncadd (%p1426_p2), [#allocation5], 4294967280 }
  0x7f   : > { %285 = sfence }
  0x80   : > { %v313_v0 = vld [vmem:[%s268_s14] sm:$0xff]  ;;  %vm316_vm0 = vcmask 261120   ;;  %v325_v3 = vld [vmem:[#allocation6] sm:$0xff]  ;;  %v326_v4 = vld [vmem:[#allocation6 + $0x8] sm:$0xff]  ;;  %v1060_v6 = vmov 0.0|0.0   ;;  %vm1061_vm1 = vmmov 0  }
  0x81   : > { %v315_v1 = vmul.f32 %v313_v0, %v313_v0  ;;  %v403_v5 = vld [vmem:[#allocation8] sm:$0xff]  ;;  %712 = vmatprep.subr.bf16.mxu0 %v1060_v6  ;;  %718 = vmatprep.subr.bf16.mxu1 %v1060_v6  ;;  %v713_v7 = vpack.c.bf16 %v326_v4, %v325_v3  ;;  %v404_v8 = vld [vmem:[#allocation8 + $0x8] sm:$0xff]  ;;  %v327_v9 = vld [vmem:[#allocation6 + $0x10] sm:$0xff]  ;;  %v1062_v14 = vmov 0.0   ;;  %s314_s26 = sld [smem:[#allocation9]]  ;;  %s676_s28 = sshll.u32 %s1044_s21, 7 }
  0x82   : > { %v328_v10 = vld [vmem:[#allocation6 + $0x18] sm:$0xff]  ;;  %v719_v11 = vpack.c.bf16 %v404_v8, %v403_v5  ;;  %v405_v12 = vld [vmem:[#allocation8 + $0x10] sm:$0xff]  ;;  %698 = vmatprep.mubr.msk.f32.mxu0 %vm1061_vm1, %v1062_v14  ;;  %709 = vmatprep.mubr.msk.f32.mxu1 %vm1061_vm1, %v1062_v14  ;;  %s305_s30 = scalar_lea.vmem [#allocation10], %s1297_s16  ;;  %s312_s7 = scalar_lea.vmem [#allocation11], %s1297_s16 }
  0x83   : > { %v317_v2 = vsel %vm316_vm0, %v315_v1, 0.0  ;;  %v406_v13 = vld [vmem:[#allocation8 + $0x18] sm:$0xff]  ;;  %714 = vmatpush3.bf16.msra.mxu0 %v713_v7  ;;  %v716_v15 = vpack.c.bf16 %v328_v10, %v327_v9  ;;  %s498_s27 = sshll.u32 %s305_s30, 4  ;;  %s512_s3 = sshll.u32 %s312_s7, 4  ;;  %s1324_s27 = int_to_ptr.vmem [resolvable:$true] %s498_s27  ;;  %s1331_s3 = int_to_ptr.vmem [resolvable:$true] %s512_s3 }
  0x84   : > { %318 = vadd.xlane.f32.xlu0 %v317_v2  ;;  %720 = vmatpush3.bf16.msra.mxu1 %v719_v11  ;;  %v722_v16 = vpack.c.bf16 %v406_v13, %v405_v12  ;;  %s1322_s17 = scalar_lea.hbm %s1406_s4, %s676_s28  ;;  %s1329_s21 = scalar_lea.hbm %s1407_s5, %s676_s28 }
  0x85   : > { %715 = vmatprep.subr.bf16.mxu0 %v1060_v6  ;;  %721 = vmatprep.subr.bf16.mxu1 %v1060_v6  ;;  %s479_s9 = scalar_lea.sflag [#allocation4], %s1294_s15  ;;  %s930_s11 = scalar_lea.vmem %s1324_s27, 128 }
  0x86   : > { %p931_p8 = scmp.ne.s32.totalorder %s1324_s27, %s930_s11  ;;  %p1427_p5 = scmp.ne.s32.totalorder %s1423_s8, 0 }
  0x87   : > { %717 = vmatpush3.bf16.msra.mxu0 %v716_v15  ;;  %v322_v19 = vstv %s314_s26  ;;  %s1063_s16 = smov [#allocation10]  }
  0x88   : > { %723 = vmatpush3.bf16.msra.mxu1 %v722_v16  ;;  %p932_p9 = pnand %p931_p8, %p1427_p5  ;;  %s934_s10 = sshll.u32 %s1063_s16, 4  ;;  %s935_s10 = int_to_ptr.vmem [resolvable:$false] %s934_s10 }
  0x89   : > { %s936_s14 = scalar_lea.vmem %s935_s10, 256  ;;  %p937_p6 = scmp.lt.s32.totalorder %s1324_s27, %s935_s10 }
  0x8a   : > { %p933_p1 = pneg %p932_p9  ;;  %p938_p10 = scmp.lt.s32.totalorder %s936_s14, %s930_s11 }
  0x8c   : > { %p939_p3 = por %p938_p10, %p937_p6 }
  0x8e   : > { %p940_p11 = pnand %p939_p3, %p933_p1 }
 0x111   : > { %v319_v17 = vpop.xlane.xlu0 %318 }
 0x112   : > { %v320_v18 = vmax.f32 %v319_v17, 1e-10 }
 0x114   : > { %827 = vrsqrt.f32 %v320_v18 }
 0x11e   : > { %v828_v20 = vpop.eup %827 }
 0x11f   : > { %v323_v21 = vmul.f32 %v828_v20, %v322_v19 }
 0x121   : > { %v324_v22 = vmul.f32 %v323_v21, %v313_v0 }
 0x123   : > { %699 = vmatmul.mubr.msk.f32.vlgmr.msra.gmra.mrb[0].mxu0 %vm316_vm0, %v324_v22  ;;  %710 = vmatmul.mubr.msk.f32.vlgmr.msra.gmra.mrb[0].mxu1 %vm316_vm0, %v324_v22 }
 0x1f6   : > { %v398_v23 = vpop.f32.mrb[0].mxu0  ;;  %v473_v24 = vpop.f32.mrb[0].mxu1 }
 0x1f7   : > { %402 = vst.msk [vmem:[%s305_s30] sm:$0xff] %vm316_vm0, %v398_v23  ;;  %477 = vst.msk [vmem:[%s312_s7] sm:$0xff] %vm316_vm0, %v473_v24  ;;  %v700_v25 = vpop.f32.mrb[1].mxu0  ;;  %v711_v26 = vpop.f32.mrb[1].mxu1 }
 0x1f8   : > { %943 = shalt.err (!%p940_p11)
}
 0x1f9   : > { %s944_s26 = scalar_lea.hbm %s1322_s17, 128  ;;  %s948_s7 = scalar_lea.hbm %s1406_s4, 256 }
 0x1fa   : > { %p945_p7 = scmp.ne.s32.totalorder %s1322_s17, %s944_s26  ;;  %p949_p0 = scmp.lt.u32.totalorder %s1322_s17, %s1406_s4 }
 0x1fb   : > { %p950_p4 = scmp.lt.u32.totalorder %s948_s7, %s944_s26  ;;  %p952_p8 = scmp.lt.u32.totalorder %s944_s26, %s1322_s17 }
 0x1fc   : > { %p946_p12 = pnand %p945_p7, %p1427_p5 }
 0x1fd   : > { %p951_p2 = por %p950_p4, %p949_p0 }
 0x1fe   : > { %p947_p13 = pneg %p946_p12 }
 0x1ff   : > { %p953_p9 = por %p952_p8, %p951_p2 }
 0x201   : > { %p954_p1 = pnand %p953_p9, %p947_p13 }
 0x203   : > { %957 = shalt.err (!%p954_p1)
}
 0x204   : > { %738 = dma.vmem_to_hbm [thread:$0]  (%p1427_p5), %s1324_s27, 128, %s1322_s17, %s479_s9  }
 0x205   : > { %s484_s12 = scalar_lea.sflag [#allocation12], %s1294_s15  ;;  %s958_s6 = scalar_lea.vmem %s1331_s3, 128 }
 0x206   : > { %p959_p6 = scmp.ne.s32.totalorder %s1331_s3, %s958_s6  ;;  %s1064_s11 = smov [#allocation11]  }
 0x207   : > { %s962_s16 = sshll.u32 %s1064_s11, 4  ;;  %s963_s16 = int_to_ptr.vmem [resolvable:$false] %s962_s16 }
 0x208   : > { %p960_p10 = pnand %p959_p6, %p1427_p5  ;;  %s964_s10 = scalar_lea.vmem %s963_s16, 256 }
 0x209   : > { %p965_p11 = scmp.lt.s32.totalorder %s1331_s3, %s963_s16  ;;  %p966_p7 = scmp.lt.s32.totalorder %s964_s10, %s958_s6 }
 0x20a   : > { %p961_p3 = pneg %p960_p10 }
 0x20b   : > { %p967_p12 = por %p966_p7, %p965_p11 }
 0x20d   : > { %p968_p13 = pnand %p967_p12, %p961_p3 }
 0x20f   : > { %971 = shalt.err (!%p968_p13)
}
 0x210   : > { %s972_s15 = scalar_lea.hbm %s1329_s21, 128  ;;  %s976_s9 = scalar_lea.hbm %s1407_s5, 256 }
 0x211   : > { %p973_p0 = scmp.ne.s32.totalorder %s1329_s21, %s972_s15  ;;  %p977_p8 = scmp.lt.u32.totalorder %s1329_s21, %s1407_s5 }
 0x212   : > { %p978_p9 = scmp.lt.u32.totalorder %s976_s9, %s972_s15  ;;  %p980_p6 = scmp.lt.u32.totalorder %s972_s15, %s1329_s21 }
 0x213   : > { %p974_p4 = pnand %p973_p0, %p1427_p5 }
 0x214   : > { %p979_p1 = por %p978_p9, %p977_p8 }
 0x215   : > { %p975_p2 = pneg %p974_p4 }
 0x216   : > { %p981_p10 = por %p980_p6, %p979_p1 }
 0x218   : > { %p982_p3 = pnand %p981_p10, %p975_p2 }
 0x21a   : > { %985 = shalt.err (!%p982_p3)
}
 0x21b   : > { %739 = dma.vmem_to_hbm [thread:$0]  (%p1427_p5), %s1331_s3, 128, %s1329_s21, %s484_s12  }
 0x21c PF: > { %s1428_s28 = sld [smem:[#allocation18_spill]]  ;;  %s524_s30 = sand.u32 1, %s1032_s18  }
 0x21d   : > { %p1430_p7 = scmp.ge.s32.totalorder %s1052_s23, 2  ;;  %s525_s7 = scalar_lea.sflag [#allocation4], %s524_s30 }
 0x222   : > { %p1429_p11 = scmp.ne.s32.totalorder %s1428_s28, 0 }
 0x224   : > { %p757_p12 = pnand %p1430_p7, %p1429_p11 }
 0x226   : > { %1023 = dma.done.wait (!%p757_p12), %s525_s7, 128  }
 0x227   : > { %1025 = vsyncadd (!%p757_p12), %s525_s7, 4294967168  ;;  %s534_s29 = scalar_lea.sflag [#allocation12], %s524_s30 }
 0x228   : > { %1027 = dma.done.wait (!%p757_p12), %s534_s29, 128  }
 0x229   : > { %1029 = vsyncadd (!%p757_p12), %s534_s29, 4294967168  ;;  %s27_s23 = sadd.s32 1, %s1052_s23   ;;  %s1431_s18 = smov %s1036_s19 }
 0x22a   : > { %p24_p13 = scmp.ge.s32.totalorder %s27_s23, 4   ;;  %s1432_s19 = smov %s1040_s20 }
 0x22b   : > { %s1433_s20 = smov %s1251_s24  ;;  %s1434_s21 = smov %s1048_s22 }
 0x22c   : > { %s1435_s22 = smov %s1437_s25  ;;  %26 = sbr.rel (!%p24_p13) target bundleno = 12 (0xc), region = 111 }
 0x233   :  { %539 = vsyncpa [#allocation3], 1 }
 0x234   :  { %541 = vsyncpa [#allocation3 + $0x1], 1 }
 0x235   :  { %542 = vsyncpa [#allocation7], 1 }
 0x236   :  { %543 = vsyncpa [#allocation4], 1 }
 0x237   :  { %545 = vsyncpa [#allocation4 + $0x1], 1 }
 0x238   :  { %546 = vsyncpa [#allocation12], 1 }
 0x239   :  { %548 = vsyncpa [#allocation12 + $0x1], 1 }
 0x23a   :  { %549 = vsyncpa [#allocation5], 1 }
 0x23b   :  { %551 = vsyncpa [#allocation5 + $0x1], 1 }

</bundles_post_ra>
